<compile_context>
chip_gen: v5e
topology: v5e:2x2
jax: 0.10.0
libtpu: 0.0.40
codegen_flags: <defaults>
</compile_context>

<pallas_src>
import functools

import jax
import jax.numpy as jnp
from jax.experimental import pallas as pl
from jax.experimental.pallas import tpu as pltpu


def _lrelu(x, slope=0.1):
    # Equivalent to LeakyReLU(slope) for 0 < slope < 1.
    return jnp.maximum(x, slope * x)


def _make_kernel(out_width):
    def kernel(x_ref, w_ref, b_ref, out_ref):
        h = x_ref[...]                                    # (TB, P) f32
        # fc1 / fc2 / fc3, each followed by LeakyReLU(0.1).
        # Padded weight columns/rows are zero, so padded lanes stay exactly 0.
        for i in range(3):                                # statically unrolled
            h = jnp.dot(h, w_ref[i], preferred_element_type=jnp.float32) + b_ref[i]
            h = _lrelu(h)
        # Fused heads: one matmul producing [means | log_vars] on lanes.
        y = jnp.dot(h, w_ref[3], preferred_element_type=jnp.float32) + b_ref[3]
        out_ref[...] = y[:, :out_width]                   # no-op slice when out_width == P
    return kernel


def pack_params(params):
    """Pack 5 Linear layers into one padded weight slab + one bias slab.

    Call ONCE at parameter-build time (outside the jitted forward).
    Weights are stored (in, out) == PyTorch W.T. The means / log_var heads are
    fused into a single (2L, 2L) weight. Everything is zero-padded to a common
    square width P so all four matmuls share one (4, P, P) VMEM slab.
    """
    w1, w2, w3 = params["w1"], params["w2"], params["w3"]
    b1, b2, b3 = params["b1"], params["b2"], params["b3"]
    w_head = jnp.concatenate([params["wm"], params["wv"]], axis=1)   # (2L, 2L)
    b_head = jnp.concatenate([params["bm"], params["bv"]], axis=1)   # (1, 2L)

    P = max(w1.shape[0], w1.shape[1], w2.shape[1], w3.shape[1], w_head.shape[1])

    def padw(w):
        return jnp.zeros((P, P), jnp.float32).at[: w.shape[0], : w.shape[1]].set(w)

    def padb(b):
        return jnp.zeros((1, P), jnp.float32).at[:, : b.shape[1]].set(b)

    w_slab = jnp.stack([padw(w1), padw(w2), padw(w3), padw(w_head)])   # (4, P, P)
    b_slab = jnp.stack([padb(b1), padb(b2), padb(b3), padb(b_head)])   # (4, 1, P)
    return w_slab, b_slab


@functools.partial(jax.jit, static_argnames=("latent_size", "tb"))
def semantic_encoder(x, w_slab, b_slab, *, latent_size, tb=None):
    """x: (B, semantic_dim) f32, slabs from pack_params().

    Returns (means, log_vars), each (B, latent_size).
    """
    B, D = x.shape
    P = w_slab.shape[1]
    out_w = 2 * latent_size

    x_pad = x if D == P else jnp.pad(x, ((0, 0), (0, P - D)))

    # Batch tiling: one tile up to 1024 rows (no per-step overhead, no idle
    # second TC split of a trivial grid); 1024-row tiles beyond that so each
    # grid step carries enough work to hide the ~0.35 us step overhead and
    # v7x's 2 TCs get >= 1 step each.
    if tb is None:
        tb = B if B <= 1024 else 1024
    grid = (pl.cdiv(B, tb),)

    # Advisory cost hint: 4 (P x P) matmuls per row, tiny byte traffic.
    cost = pl.CostEstimate(
        flops=2 * B * P * P * 4,
        transcendentals=0,
        bytes_accessed=4 * (x_pad.size + w_slab.size + b_slab.size + B * out_w),
    )

    # Constant index_map => a second pipeline buffer would never be used.
    resident = pl.Buffered(1)

    out = pl.pallas_call(
        _make_kernel(out_w),
        out_shape=jax.ShapeDtypeStruct((B, out_w), jnp.float32),
        grid=grid,
        in_specs=[
            pl.BlockSpec((tb, P), lambda i: (i, 0)),                   # batch-tiled input
            pl.BlockSpec((4, P, P), lambda i: (0, 0, 0),
                         pipeline_mode=resident),                      # weights stay resident
            pl.BlockSpec((4, 1, P), lambda i: (0, 0, 0),
                         pipeline_mode=resident),                      # biases stay resident
        ],
        out_specs=pl.BlockSpec((tb, out_w), lambda i: (i, 0)),
        compiler_params=pltpu.CompilerParams(
            dimension_semantics=("parallel",)),
        cost_estimate=cost,
    )(x_pad, w_slab, b_slab)

    # Split fused head output into (means, log_vars).
    return out[:, :latent_size], out[:, latent_size:out_w]


def init_params(key, semantic_dim, latent_size):
    """weights_init: W ~ N(0, 0.02), b = 0. Weights stored (in, out) = W.T."""
    D = semantic_dim
    H = D // 2
    L2 = latent_size * 2
    L = latent_size
    ks = jax.random.split(key, 5)
    f = jnp.float32
    return {
        "w1": 0.02 * jax.random.normal(ks[0], (D, D), f),
        "b1": jnp.zeros((1, D), f),
        "w2": 0.02 * jax.random.normal(ks[1], (D, H), f),
        "b2": jnp.zeros((1, H), f),
        "w3": 0.02 * jax.random.normal(ks[2], (H, L2), f),
        "b3": jnp.zeros((1, L2), f),
        "wm": 0.02 * jax.random.normal(ks[3], (L2, L), f),
        "bm": jnp.zeros((1, L), f),
        "wv": 0.02 * jax.random.normal(ks[4], (L2, L), f),
        "bv": jnp.zeros((1, L), f),
    }


def reference_forward(x, p):
    """Plain-JAX reference (unfused, unpadded) for correctness checking."""
    h = _lrelu(x @ p["w1"] + p["b1"])
    h = _lrelu(h @ p["w2"] + p["b2"])
    h = _lrelu(h @ p["w3"] + p["b3"])
    return h @ p["wm"] + p["bm"], h @ p["wv"] + p["bv"]


if __name__ == "__main__":
    # Small shapes consistent with the module: cfg.MODEL.semantic_dim=32,
    # cfg.MODEL.APFG_latent_size=16, batch of 8 semantic vectors.
    B, semantic_dim, latent_size = 8, 32, 16

    key = jax.random.PRNGKey(0)
    k_x, k_p, k_x2 = jax.random.split(key, 3)
    x = jax.random.normal(k_x, (B, semantic_dim), jnp.float32)
    params = init_params(k_p, semantic_dim, latent_size)

    # Pack the 10 small tensors into two slabs ONCE, outside the jitted path.
    w_slab, b_slab = pack_params(params)
    w_slab = jax.block_until_ready(w_slab)
    b_slab = jax.block_until_ready(b_slab)

    means, log_vars = semantic_encoder(x, w_slab, b_slab, latent_size=latent_size)
    means = jax.block_until_ready(means)
    log_vars = jax.block_until_ready(log_vars)

    ref_means, ref_log_vars = reference_forward(x, params)
    assert means.shape == (B, latent_size) and log_vars.shape == (B, latent_size)
    assert jnp.allclose(means, ref_means, atol=1e-5, rtol=1e-5)
    assert jnp.allclose(log_vars, ref_log_vars, atol=1e-5, rtol=1e-5)

    # Ragged-grid check (B % TB != 0, grid=(2,)): the masked writeback of the
    # partial last tile must not leak garbage into valid rows.
    B2 = 200
    x2 = jax.random.normal(k_x2, (B2, semantic_dim), jnp.float32)
    m2, v2 = semantic_encoder(x2, w_slab, b_slab, latent_size=latent_size, tb=128)
    m2 = jax.block_until_ready(m2)
    v2 = jax.block_until_ready(v2)
    r_m2, r_v2 = reference_forward(x2, params)
    assert jnp.allclose(m2, r_m2, atol=1e-5, rtol=1e-5)
    assert jnp.allclose(v2, r_v2, atol=1e-5, rtol=1e-5)

    print("KERNEL_OK")
</pallas_src>

<mosaic_0001>
module attributes {stable_mosaic.version = 11 : i64} {
  func.func @kernel(%arg0: i32, %arg1: memref<8x32xf32, #tpu.memory_space<vmem>>, %arg2: memref<4x32x32xf32, #tpu.memory_space<vmem>>, %arg3: memref<4x1x32xf32, #tpu.memory_space<vmem>>, %arg4: memref<8x32xf32, #tpu.memory_space<vmem>>) attributes {dimension_semantics = [#tpu.dimension_semantics<parallel>], iteration_bounds = array<i64: 1>, scalar_prefetch = 0 : i64, scratch_operands = 0 : i64, tpu.core_type = #tpu.core_type<tc>, window_params = [{transform_indices = @transform_0, window_bounds = array<i64: 8, 32>}, {pipeline_mode = #tpu.pipeline_mode<synchronous>, transform_indices = @transform_1, window_bounds = array<i64: 4, 32, 32>}, {pipeline_mode = #tpu.pipeline_mode<synchronous>, transform_indices = @transform_2, window_bounds = array<i64: 4, 1, 32>}, {transform_indices = @transform_3, window_bounds = array<i64: 8, 32>}]} {
    %c0 = arith.constant 0 : index
    %c0_0 = arith.constant 0 : index
    %0 = vector.load %arg1[%c0, %c0_0] : memref<8x32xf32, #tpu.memory_space<vmem>>, vector<8x32xf32>
    %c0_1 = arith.constant 0 : index
    %c0_2 = arith.constant 0 : index
    %c0_3 = arith.constant 0 : index
    %1 = vector.load %arg2[%c0_1, %c0_2, %c0_3] : memref<4x32x32xf32, #tpu.memory_space<vmem>>, vector<1x32x32xf32>
    %2 = vector.shape_cast %1 : vector<1x32x32xf32> to vector<32x32xf32>
    %cst = arith.constant dense<0.000000e+00> : vector<8x32xf32>
    %3 = tpu.matmul %0, %2, %cst {dimension_numbers = #tpu.dot_dimension_numbers<[1], [0], [0], [1], [0, 0, 1, 1], [], []>} : vector<8x32xf32>, vector<32x32xf32>, vector<8x32xf32> -> vector<8x32xf32>
    %c0_4 = arith.constant 0 : index
    %c0_5 = arith.constant 0 : index
    %c0_6 = arith.constant 0 : index
    %4 = vector.load %arg3[%c0_4, %c0_5, %c0_6] : memref<4x1x32xf32, #tpu.memory_space<vmem>>, vector<1x1x32xf32>
    %5 = vector.shape_cast %4 : vector<1x1x32xf32> to vector<1x32xf32>
    %6 = vector.broadcast %5 : vector<1x32xf32> to vector<8x32xf32>
    %7 = arith.addf %3, %6 : vector<8x32xf32>
    %cst_7 = arith.constant 1.000000e-01 : f32
    %8 = vector.broadcast %cst_7 : f32 to vector<8x32xf32>
    %9 = arith.mulf %8, %7 : vector<8x32xf32>
    %10 = arith.maximumf %7, %9 : vector<8x32xf32>
    %c1 = arith.constant 1 : index
    %c0_8 = arith.constant 0 : index
    %c0_9 = arith.constant 0 : index
    %11 = vector.load %arg2[%c1, %c0_8, %c0_9] : memref<4x32x32xf32, #tpu.memory_space<vmem>>, vector<1x32x32xf32>
    %12 = vector.shape_cast %11 : vector<1x32x32xf32> to vector<32x32xf32>
    %cst_10 = arith.constant dense<0.000000e+00> : vector<8x32xf32>
    %13 = tpu.matmul %10, %12, %cst_10 {dimension_numbers = #tpu.dot_dimension_numbers<[1], [0], [0], [1], [0, 0, 1, 1], [], []>} : vector<8x32xf32>, vector<32x32xf32>, vector<8x32xf32> -> vector<8x32xf32>
    %c1_11 = arith.constant 1 : index
    %c0_12 = arith.constant 0 : index
    %c0_13 = arith.constant 0 : index
    %14 = vector.load %arg3[%c1_11, %c0_12, %c0_13] : memref<4x1x32xf32, #tpu.memory_space<vmem>>, vector<1x1x32xf32>
    %15 = vector.shape_cast %14 : vector<1x1x32xf32> to vector<1x32xf32>
    %16 = vector.broadcast %15 : vector<1x32xf32> to vector<8x32xf32>
    %17 = arith.addf %13, %16 : vector<8x32xf32>
    %cst_14 = arith.constant 1.000000e-01 : f32
    %18 = vector.broadcast %cst_14 : f32 to vector<8x32xf32>
    %19 = arith.mulf %18, %17 : vector<8x32xf32>
    %20 = arith.maximumf %17, %19 : vector<8x32xf32>
    %c2 = arith.constant 2 : index
    %c0_15 = arith.constant 0 : index
    %c0_16 = arith.constant 0 : index
    %21 = vector.load %arg2[%c2, %c0_15, %c0_16] : memref<4x32x32xf32, #tpu.memory_space<vmem>>, vector<1x32x32xf32>
    %22 = vector.shape_cast %21 : vector<1x32x32xf32> to vector<32x32xf32>
    %cst_17 = arith.constant dense<0.000000e+00> : vector<8x32xf32>
    %23 = tpu.matmul %20, %22, %cst_17 {dimension_numbers = #tpu.dot_dimension_numbers<[1], [0], [0], [1], [0, 0, 1, 1], [], []>} : vector<8x32xf32>, vector<32x32xf32>, vector<8x32xf32> -> vector<8x32xf32>
    %c2_18 = arith.constant 2 : index
    %c0_19 = arith.constant 0 : index
    %c0_20 = arith.constant 0 : index
    %24 = vector.load %arg3[%c2_18, %c0_19, %c0_20] : memref<4x1x32xf32, #tpu.memory_space<vmem>>, vector<1x1x32xf32>
    %25 = vector.shape_cast %24 : vector<1x1x32xf32> to vector<1x32xf32>
    %26 = vector.broadcast %25 : vector<1x32xf32> to vector<8x32xf32>
    %27 = arith.addf %23, %26 : vector<8x32xf32>
    %cst_21 = arith.constant 1.000000e-01 : f32
    %28 = vector.broadcast %cst_21 : f32 to vector<8x32xf32>
    %29 = arith.mulf %28, %27 : vector<8x32xf32>
    %30 = arith.maximumf %27, %29 : vector<8x32xf32>
    %c3 = arith.constant 3 : index
    %c0_22 = arith.constant 0 : index
    %c0_23 = arith.constant 0 : index
    %31 = vector.load %arg2[%c3, %c0_22, %c0_23] : memref<4x32x32xf32, #tpu.memory_space<vmem>>, vector<1x32x32xf32>
    %32 = vector.shape_cast %31 : vector<1x32x32xf32> to vector<32x32xf32>
    %cst_24 = arith.constant dense<0.000000e+00> : vector<8x32xf32>
    %33 = tpu.matmul %30, %32, %cst_24 {dimension_numbers = #tpu.dot_dimension_numbers<[1], [0], [0], [1], [0, 0, 1, 1], [], []>} : vector<8x32xf32>, vector<32x32xf32>, vector<8x32xf32> -> vector<8x32xf32>
    %c3_25 = arith.constant 3 : index
    %c0_26 = arith.constant 0 : index
    %c0_27 = arith.constant 0 : index
    %34 = vector.load %arg3[%c3_25, %c0_26, %c0_27] : memref<4x1x32xf32, #tpu.memory_space<vmem>>, vector<1x1x32xf32>
    %35 = vector.shape_cast %34 : vector<1x1x32xf32> to vector<1x32xf32>
    %36 = vector.broadcast %35 : vector<1x32xf32> to vector<8x32xf32>
    %37 = arith.addf %33, %36 : vector<8x32xf32>
    %c0_28 = arith.constant 0 : index
    %c0_29 = arith.constant 0 : index
    %38 = vector.load %arg4[%c0_28, %c0_29] : memref<8x32xf32, #tpu.memory_space<vmem>>, vector<8x32xf32>
    tpu.vector_store %arg4[%c0_28, %c0_29], %37 {strides = array<i32>} : memref<8x32xf32, #tpu.memory_space<vmem>>, vector<8x32xf32>,
    return
  }
  func.func @transform_0(%arg0: i32) -> (i32, i32) {
    %c0_i32 = arith.constant 0 : i32
    %c0_i32_0 = arith.constant 0 : i32
    return %arg0, %c0_i32 : i32, i32
  }
  func.func @transform_1(%arg0: i32) -> (i32, i32, i32) {
    %c0_i32 = arith.constant 0 : i32
    %c0_i32_0 = arith.constant 0 : i32
    %c0_i32_1 = arith.constant 0 : i32
    %c0_i32_2 = arith.constant 0 : i32
    return %c0_i32, %c0_i32_0, %c0_i32_1 : i32, i32, i32
  }
  func.func @transform_2(%arg0: i32) -> (i32, i32, i32) {
    %c0_i32 = arith.constant 0 : i32
    %c0_i32_0 = arith.constant 0 : i32
    %c0_i32_1 = arith.constant 0 : i32
    %c0_i32_2 = arith.constant 0 : i32
    return %c0_i32, %c0_i32_0, %c0_i32_1 : i32, i32, i32
  }
  func.func @transform_3(%arg0: i32) -> (i32, i32) {
    %c0_i32 = arith.constant 0 : i32
    %c0_i32_0 = arith.constant 0 : i32
    return %arg0, %c0_i32 : i32, i32
  }
}

</mosaic_0001>

<bundles_post_ra>
// kernel: semantic_encoder.1
= control target key start
LH: loop header
LB: loop body
LE: loop exit
PB: predicated region body
PF: predicated region fallthrough
CT: control target
= control target key end

     0   :  { %8 = vsyncpa [#allocation3], 0  ;;  %s339_s0 = inlined_call_operand.hbm [shape: f32[8,32], index: 0, kind: input, shape index: {}]   ;;  %s340_s1 = inlined_call_operand.hbm [shape: f32[4,32,32], index: 1, kind: input, shape index: {}]   ;;  %s341_s2 = inlined_call_operand.hbm [shape: f32[4,1,32], index: 2, kind: input, shape index: {}]   ;;  %s342_s3 = inlined_call_operand.vmem [shape: f32[8,32], index: 3, kind: output, shape index: {}]  }
   0x1   :  { %9 = vsyncpa [#allocation5], 0  ;;  %s25_s14 = sshll.u32 %s340_s1, 4  ;;  %s295_s15 = smov [#allocation4]   ;;  %s26_s14 = int_to_ptr.hbm [resolvable:$true] %s25_s14 }
   0x2   :  { %s27_s16 = sshll.u32 %s295_s15, 4  ;;  %s15_s19 = sshll.u32 %s339_s0, 4  ;;  %s28_s16 = int_to_ptr.vmem [resolvable:$true] %s27_s16  ;;  %s16_s19 = int_to_ptr.hbm [resolvable:$true] %s15_s19 }
   0x3   :  { %s296_s20 = smov 128   ;;  %s297_s21 = smov 8  }
   0x4   :  { %33 = dma.hbm_to_vmem [thread:$0]  %s26_s14, 2048, %s28_s16, [#allocation5], %s296_s20, %s296_s20, %s297_s21  }
   0x5   :  { %s298_s22 = smov [#allocation2]   ;;  %s38_s26 = sshll.u32 %s341_s2, 4  ;;  %s39_s26 = int_to_ptr.hbm [resolvable:$true] %s38_s26 }
   0x6   :  { %s17_s23 = sshll.u32 %s298_s22, 4  ;;  %s299_s1 = smov [#allocation6]   ;;  %s18_s23 = int_to_ptr.vmem [resolvable:$true] %s17_s23 }
   0x7   :  { %20 = dma.hbm_to_vmem [thread:$0]  %s16_s19, 128, %s18_s23, [#allocation3]  }
   0x8   :  { %s40_s27 = sshll.u32 %s299_s1, 4  ;;  %s300_s28 = smov 16   ;;  %s41_s27 = int_to_ptr.vmem [resolvable:$true] %s40_s27 }
   0x9   :  { %s301_s29 = smov 1  }
   0xa   :  { %46 = dma.hbm_to_vmem [thread:$0]  %s39_s26, 64, %s41_s27, [#allocation5], %s300_s28, %s300_s28, %s301_s29  }
   0xb   :  { %291 = dma.done.wait [#allocation3], 128  }
   0xc   :  { %292 = vsyncadd [#allocation3], 4294967168 }
   0xd   :  { %293 = dma.done.wait [#allocation5], 2112  }
   0xe   :  { %294 = vsyncadd [#allocation5], 4294965184  ;;  %v63_v0 = vld [vmem:[#allocation4 + $0x18] sm:$0xff]  ;;  %v62_v1 = vld [vmem:[#allocation4 + $0x10] sm:$0xff]  ;;  %vm68_vm0 = vcmask 261120  }
   0xf   :  { %84 = vmatpush.msra.mxu0 %v63_v0  ;;  %v61_v2 = vld [vmem:[#allocation4 + $0x8] sm:$0xff]  ;;  %v60_v3 = vld [vmem:[#allocation4] sm:$0xff]  ;;  %v59_v4 = vld [vmem:[#allocation2] sm:$0xff] }
  0x10   :  { %v98_v5 = vld [vmem:[#allocation4 + $0x38] sm:$0xff]  ;;  %v97_v6 = vld [vmem:[#allocation4 + $0x30] sm:$0xff]  ;;  %v96_v7 = vld [vmem:[#allocation4 + $0x28] sm:$0xff] }
  0x11   :  { %85 = vmatpush.msra.mxu0 %v62_v1  ;;  %119 = vmatpush.msra.mxu1 %v98_v5  ;;  %v95_v8 = vld [vmem:[#allocation4 + $0x20] sm:$0xff]  ;;  %v133_v14 = vld [vmem:[#allocation4 + $0x58] sm:$0xff]  ;;  %v132_v15 = vld [vmem:[#allocation4 + $0x50] sm:$0xff] }
  0x12   :  { %v215_v9 = vld [vmem:[#allocation6] ss:$0 sm:$0xff]  ;;  %154 = vmatpush.msra.mxu2 %v133_v14  ;;  %v131_v16 = vld [vmem:[#allocation4 + $0x48] sm:$0xff]  ;;  %v216_v18 = vld [vmem:[#allocation6 + $0x1] ss:$0 sm:$0xff] }
  0x13   :  { %86 = vmatpush.msra.mxu0 %v61_v2  ;;  %120 = vmatpush.msra.mxu1 %v97_v6  ;;  %v130_v17 = vld [vmem:[#allocation4 + $0x40] sm:$0xff]  ;;  %v168_v23 = vld [vmem:[#allocation4 + $0x78] sm:$0xff]  ;;  %v167_v24 = vld [vmem:[#allocation4 + $0x70] sm:$0xff] }
  0x14   :  { %155 = vmatpush.msra.mxu2 %v132_v15  ;;  %189 = vmatpush.msra.mxu3 %v168_v23  ;;  %v166_v25 = vld [vmem:[#allocation4 + $0x68] sm:$0xff]  ;;  %v165_v26 = vld [vmem:[#allocation4 + $0x60] sm:$0xff] }
  0x15   :  { %87 = vmatpush.msra.mxu0 %v60_v3  ;;  %121 = vmatpush.msra.mxu1 %v96_v7  ;;  %v217_v27 = vld [vmem:[#allocation6 + $0x2] ss:$0 sm:$0xff]  ;;  %v218_v32 = vld [vmem:[#allocation6 + $0x3] ss:$0 sm:$0xff] }
  0x16   :  { %204 = vmatmul.msk.f32.vlgmr.msra.gmra.mxu0 %vm68_vm0, %v59_v4  ;;  %156 = vmatpush.msra.mxu2 %v131_v16 }
  0x17   :  { %122 = vmatpush.msra.mxu1 %v95_v8  ;;  %190 = vmatpush.msra.mxu3 %v167_v24 }
  0x18   :  { %157 = vmatpush.msra.mxu2 %v130_v17 }
  0x19   :  { %191 = vmatpush.msra.mxu3 %v166_v25 }
  0x1b   :  { %192 = vmatpush.msra.mxu3 %v165_v26 }
  0x93   :  { %v89_v10 = vpop.f32.mrf.mxu0 }
  0x94   :  { %v90_v11 = vadd.f32 %v215_v9, %v89_v10 }
  0x96   :  { %v92_v12 = vmul.f32 0.1, %v90_v11 }
  0x98   :  { %v93_v13 = vmax.f32 %v90_v11, %v92_v12 }
  0x9a   :  { %205 = vmatmul.msk.f32.vlgmr.msra.gmra.mxu1 %vm68_vm0, %v93_v13 }
 0x117   :  { %v124_v19 = vpop.f32.mrf.mxu1 }
 0x118   :  { %v125_v20 = vadd.f32 %v216_v18, %v124_v19 }
 0x11a   :  { %v127_v21 = vmul.f32 0.1, %v125_v20 }
 0x11c   :  { %v128_v22 = vmax.f32 %v125_v20, %v127_v21 }
 0x11e   :  { %206 = vmatmul.msk.f32.vlgmr.msra.gmra.mxu2 %vm68_vm0, %v128_v22 }
 0x1a1   :  { %v159_v28 = vpop.f32.mrf.mxu2 }
 0x1a2   :  { %v160_v29 = vadd.f32 %v217_v27, %v159_v28 }
 0x1a4   :  { %v162_v30 = vmul.f32 0.1, %v160_v29 }
 0x1a6   :  { %v163_v31 = vmax.f32 %v160_v29, %v162_v30 }
 0x1a8   :  { %207 = vmatmul.msk.f32.vlgmr.msra.gmra.mxu3 %vm68_vm0, %v163_v31 }
 0x22b   :  { %v194_v33 = vpop.f32.mrf.mxu3 }
 0x22c   :  { %v195_v34 = vadd.f32 %v218_v32, %v194_v33 }
 0x22e   :  { %197 = vst.msk [vmem:[%s342_s3] sm:$0xff] %vm68_vm0, %v195_v34 }
 0x22f   :  { %202 = vsyncpa [#allocation3], 1 }
 0x230   :  { %203 = vsyncpa [#allocation5], 1 }

</bundles_post_ra>
